<compile_context>
chip_gen: v7x
topology: tpu7x:2x2x1
jax: 0.10.0
libtpu: 0.0.40
codegen_flags: <defaults>
</compile_context>

<pallas_src>
import functools
import math

import jax
import jax.numpy as jnp
from jax.experimental import pallas as pl
from jax.experimental.pallas import tpu as pltpu


_SUBLANE_BY_ITEMSIZE = {4: 8, 2: 16, 1: 32}  # Mosaic sublane tile per dtype width
_LANE = 128


def _round_down(v, m):
    return (v // m) * m


def _round_up(v, m):
    return -(-v // m) * m


@functools.lru_cache(maxsize=None)
def _tpu_defaults():
    """Per-generation tuning: (vmem_budget, vmem_limit, min_grid_steps, min_pallas_bytes).

    - vmem_budget: target for the double-buffered, lane-padded in+out block
      footprint (kept <= ~24 MiB: safe on v7x's 64 MiB-per-TC VMEM and well
      under the explicit 32 MiB scoped limit we request on every generation).
    - min_grid_steps: v7x has 2 TensorCores sharing the "parallel" grid axis,
      so prefer >=4 (even) steps there -- but only when blocks stay >= ~1 MiB.
    - min_pallas_bytes: XLA-fallback threshold, scaled with HBM bandwidth.
    """
    try:
        kind = jax.devices()[0].device_kind.lower()
    except Exception:  # pragma: no cover - defensive; defaults are safe anywhere
        kind = ""
    vmem_budget = 24 * 1024 * 1024
    vmem_limit = 32 * 1024 * 1024
    min_grid_steps = 1
    min_pallas_bytes = 1 << 20
    if "v7" in kind:
        min_grid_steps = 4            # keep both TensorCores busy, balanced
        min_pallas_bytes = 4 << 20    # 3.2 TB/s HBM: small arrays aren't worth a call
    return vmem_budget, vmem_limit, min_grid_steps, min_pallas_bytes


def _antirectifier_kernel(x_ref, o_ref):
    d = x_ref.shape[-1]
    r = jnp.maximum(x_ref[...], 0)
    if d % _LANE == 0:
        # Lane-aligned halves: two direct, unmasked full-width slab stores.
        # No (rt, 2D) VMEM temp, half the vst traffic of a concat+store
        # (matters most on v5e's single vst slot/cycle).
        o_ref[:, :d] = r
        o_ref[:, d:] = -r
    else:
        # D not a multiple of 128: build the (rt, 2D) tile once and do a single
        # full-extent store (the temp is counted in the VMEM budget).
        o_ref[...] = jnp.concatenate([r, -r], axis=-1)


def _pick_row_tile(rows, d, itemsize, *,
                   vmem_budget_bytes,
                   min_grid_steps,
                   target_block_in_bytes=1 << 20,
                   max_rows_per_tile=32768):
    """Largest sublane-aligned row tile whose real (lane-padded, double-buffered)
    VMEM footprint fits the budget; optionally split into >= min_grid_steps
    blocks (v7x megacore) but never below ~target_block_in_bytes of input."""
    sub = _SUBLANE_BY_ITEMSIZE.get(itemsize, 8)
    if rows <= sub:
        return rows  # full-extent block is always a legal block shape

    # Real per-row VMEM use: last dims are padded to 128 lanes, and both the
    # input and output blocks are double-buffered by the BlockSpec pipeline.
    d_in_pad = _round_up(d, _LANE)
    d_out_pad = _round_up(2 * d, _LANE)
    bytes_per_row = 2 * (d_in_pad + d_out_pad) * itemsize
    if d % _LANE != 0:
        # Concat fallback path materializes one extra (rt, 2D) VMEM temp.
        bytes_per_row += d_out_pad * itemsize

    rt = max(sub, _round_down(vmem_budget_bytes // bytes_per_row, sub))
    rt = min(rt, max_rows_per_tile)

    # Generation-aware minimum step count (v7x: 2 TCs on the "parallel" axis),
    # applied only when each resulting block still carries >= ~1 MiB of input
    # (blocks below that are measurably off the HBM roofline).
    if min_grid_steps > 1:
        rt_steps = max(sub, _round_up(pl.cdiv(rows, min_grid_steps), sub))
        if rt_steps * d * itemsize >= target_block_in_bytes:
            rt = min(rt, rt_steps)

    if rt >= rows:
        return rows
    return rt


def _antirectifier_pallas(x, row_tile=None):
    orig_shape = x.shape
    d = orig_shape[-1]
    rows = math.prod(orig_shape[:-1])
    itemsize = jnp.dtype(x.dtype).itemsize
    sub = _SUBLANE_BY_ITEMSIZE.get(itemsize, 8)

    vmem_budget, vmem_limit, min_grid_steps, _ = _tpu_defaults()

    if row_tile is None:
        row_tile = _pick_row_tile(rows, d, itemsize,
                                  vmem_budget_bytes=vmem_budget,
                                  min_grid_steps=min_grid_steps)
    else:
        # Legalize a caller-provided tile: sublane-aligned or full extent.
        row_tile = min(int(row_tile), rows)
        if row_tile < rows:
            row_tile = max(sub, _round_down(row_tile, sub))

    x2 = x.reshape(rows, d)
    # Non-dividing rows are fine: the last (partial) block is padded on read
    # and out-of-bounds writes are dropped -- correct for this elementwise map.
    grid = (pl.cdiv(rows, row_tile),)

    out2 = pl.pallas_call(
        _antirectifier_kernel,
        out_shape=jax.ShapeDtypeStruct((rows, 2 * d), x.dtype),
        grid_spec=pl.GridSpec(
            grid=grid,
            in_specs=[pl.BlockSpec((row_tile, d), lambda i: (i, 0))],
            out_specs=pl.BlockSpec((row_tile, 2 * d), lambda i: (i, 0)),
        ),
        compiler_params=pltpu.CompilerParams(
            dimension_semantics=("parallel",),
            # Explicit limit (instead of relying on per-generation scoped
            # defaults): blocks are budgeted to ~24 MiB double-buffered, so
            # 32 MiB is safe on v5e/v6e (128 MiB VMEM) and v7x (64 MiB/TC).
            vmem_limit_bytes=vmem_limit,
        ),
        cost_estimate=pl.CostEstimate(
            flops=2 * rows * d,                      # relu + negate
            transcendentals=0,
            bytes_accessed=3 * rows * d * itemsize,  # read N, write 2N
        ),
    )(x2)

    return out2.reshape(*orig_shape[:-1], 2 * d)


def antirectifier(x, *, row_tile=None, force_pallas=False,
                  min_pallas_bytes=None):
    """concat(relu(x), -relu(x)) along the last axis (PyTorch Antirectifier)."""
    if min_pallas_bytes is None:
        min_pallas_bytes = _tpu_defaults()[3]
    itemsize = jnp.dtype(x.dtype).itemsize
    if not force_pallas and x.size * itemsize < min_pallas_bytes:
        # Tiny activations: a standalone pallas_call is pure launch/step
        # overhead for 3 VPU ops -- let XLA fuse it into the surrounding graph.
        r = jnp.maximum(x, 0)
        return jnp.concatenate([r, -r], axis=-1)
    return _antirectifier_pallas(x, row_tile=row_tile)


if __name__ == "__main__":
    k1, k2 = jax.random.split(jax.random.PRNGKey(0))

    # 1) Small NCHW-style input matching the original demo (D=16 -> exercises
    #    the non-lane-aligned store path). Force Pallas so the kernel itself is
    #    checked (auto-dispatch would route 32 KiB to XLA).
    x_small = jax.random.normal(k1, (2, 4, 16, 16), dtype=jnp.float32)
    out_small = jax.block_until_ready(antirectifier(x_small, force_pallas=True))
    r_small = jnp.maximum(x_small, 0.0)
    ref_small = jnp.concatenate([r_small, -r_small], axis=-1)
    assert out_small.shape == (2, 4, 16, 32), out_small.shape
    assert jnp.array_equal(out_small, ref_small), "small-input mismatch"

    # 2) Larger, lane-aligned input (D=128 -> output width 256): exercises the
    #    direct two-slab unmasked store path with byte-sized row tiling.
    x_big = jax.random.normal(k2, (4, 8, 64, 128), dtype=jnp.float32)
    out_big = jax.block_until_ready(antirectifier(x_big, force_pallas=True))
    r_big = jnp.maximum(x_big, 0.0)
    ref_big = jnp.concatenate([r_big, -r_big], axis=-1)
    assert out_big.shape == (4, 8, 64, 256), out_big.shape
    assert jnp.array_equal(out_big, ref_big), "large-input mismatch"

    print("KERNEL_OK")
</pallas_src>

<mosaic_0001>
module attributes {stable_mosaic.version = 11 : i64} {
  func.func @_antirectifier_kernel(%arg0: i32, %arg1: memref<128x16xf32, #tpu.memory_space<vmem>>, %arg2: memref<128x32xf32, #tpu.memory_space<vmem>>) attributes {dimension_semantics = [#tpu.dimension_semantics<parallel>], iteration_bounds = array<i64: 1>, scalar_prefetch = 0 : i64, scratch_operands = 0 : i64, tpu.core_type = #tpu.core_type<tc>, window_params = [{transform_indices = @transform_0, window_bounds = array<i64: 128, 16>}, {transform_indices = @transform_1, window_bounds = array<i64: 128, 32>}]} {
    %c0 = arith.constant 0 : index
    %c0_0 = arith.constant 0 : index
    %0 = vector.load %arg1[%c0, %c0_0] : memref<128x16xf32, #tpu.memory_space<vmem>>, vector<128x16xf32>
    %cst = arith.constant 0.000000e+00 : f32
    %1 = vector.broadcast %cst : f32 to vector<128x16xf32>
    %2 = arith.maximumf %0, %1 : vector<128x16xf32>
    %cst_1 = arith.constant 0.000000e+00 : f32
    %3 = vector.broadcast %cst_1 : f32 to vector<128x16xf32>
    %4 = arith.subf %3, %2 : vector<128x16xf32>
    %5 = tpu.concatenate %2, %4 in 1 : vector<128x16xf32>, vector<128x16xf32> -> vector<128x32xf32>
    %c0_2 = arith.constant 0 : index
    %c0_3 = arith.constant 0 : index
    %6 = vector.load %arg2[%c0_2, %c0_3] : memref<128x32xf32, #tpu.memory_space<vmem>>, vector<128x32xf32>
    tpu.vector_store %arg2[%c0_2, %c0_3], %5 {strides = array<i32>} : memref<128x32xf32, #tpu.memory_space<vmem>>, vector<128x32xf32>,
    return
  }
  func.func @transform_0(%arg0: i32) -> (i32, i32) {
    %c0_i32 = arith.constant 0 : i32
    %c0_i32_0 = arith.constant 0 : i32
    return %arg0, %c0_i32 : i32, i32
  }
  func.func @transform_1(%arg0: i32) -> (i32, i32) {
    %c0_i32 = arith.constant 0 : i32
    %c0_i32_0 = arith.constant 0 : i32
    return %arg0, %c0_i32 : i32, i32
  }
}

</mosaic_0001>

<bundles_post_ra>
// kernel: tpu_custom_call.1
= control target key start
LH: loop header
LB: loop body
LE: loop exit
PB: predicated region body
PF: predicated region fallthrough
CT: control target
= control target key end

     0   :  { %s159_s18 = smov 16   ;;  %vm120_vm0 = vcmask 130048   ;;  %vm137_vm1 = vcmask 261120   ;;  %s394_s0 = inlined_call_operand.vmem [shape: f32[128,16], index: 0, kind: input, shape index: {}]   ;;  %s395_s1 = inlined_call_operand.vmem [shape: f32[128,32], index: 1, kind: output, shape index: {}]  }
   0x1   :  { %v173_v0 = vld [vmem:[%s394_s0 + $0x10] sm:$0xff]  ;;  %v178_v1 = vld [vmem:[%s394_s0] sm:$0xff]  ;;  %v183_v2 = vld [vmem:[%s394_s0 + $0x18] sm:$0xff] }
   0x2   :  { %v26_v3 = vmax.f32 %v173_v0, 0.0  ;;  %v24_v4 = vmax.f32 %v178_v1, 0.0  ;;  %v27_v5 = vmax.f32 %v183_v2, 0.0  ;;  %v191_v6 = vld [vmem:[%s394_s0 + $0x8] sm:$0xff]  ;;  %v202_v9 = vld [vmem:[%s394_s0 + $0x20] sm:$0xff]  ;;  %v219_v16 = vld [vmem:[%s394_s0 + $0x38] sm:$0xff] }
   0x3   :  { %v25_v7 = vmax.f32 %v191_v6, 0.0  ;;  %v197_v8 = vld [vmem:[%s394_s0 + $0x28] sm:$0xff]  ;;  %v28_v15 = vmax.f32 %v202_v9, 0.0  ;;  %v224_v17 = vld [vmem:[%s394_s0 + $0x30] sm:$0xff]  ;;  %v31_v20 = vmax.f32 %v219_v16, 0.0  ;;  %v242_v23 = vld [vmem:[%s394_s0 + $0x40] sm:$0xff] }
   0x4   :  { %v42_v10 = vsub.f32 0.0, %v26_v3  ;;  %v40_v11 = vsub.f32 0.0, %v24_v4  ;;  %v43_v12 = vsub.f32 0.0, %v27_v5  ;;  %v29_v14 = vmax.f32 %v197_v8, 0.0  ;;  %v237_v22 = vld [vmem:[%s394_s0 + $0x48] sm:$0xff]  ;;  %v255_v28 = vld [vmem:[%s394_s0 + $0x58] sm:$0xff] }
   0x5   :  { %v41_v13 = vsub.f32 0.0, %v25_v7  ;;  %v44_v19 = vsub.f32 0.0, %v28_v15  ;;  %v30_v21 = vmax.f32 %v224_v17, 0.0  ;;  %v47_v24 = vsub.f32 0.0, %v31_v20  ;;  %v260_v29 = vld [vmem:[%s394_s0 + $0x50] sm:$0xff]  ;;  %v269_v34 = vld [vmem:[%s394_s0 + $0x68] sm:$0xff] }
   0x6   :  { %76 = vrot.lane.b32.xlu1 %v42_v10, %s159_s18  ;;  %72 = vrot.lane.b32.xlu0 %v40_v11, %s159_s18  ;;  %v45_v18 = vsub.f32 0.0, %v29_v14  ;;  %v33_v26 = vmax.f32 %v237_v22, 0.0  ;;  %v32_v27 = vmax.f32 %v242_v23, 0.0  ;;  %v35_v32 = vmax.f32 %v255_v28, 0.0  ;;  %v274_v35 = vld [vmem:[%s394_s0 + $0x60] sm:$0xff]  ;;  %v283_v40 = vld [vmem:[%s394_s0 + $0x78] sm:$0xff] }
   0x7   :  { %v46_v25 = vsub.f32 0.0, %v30_v21  ;;  %v34_v33 = vmax.f32 %v260_v29, 0.0  ;;  %v37_v38 = vmax.f32 %v269_v34, 0.0  ;;  %v36_v39 = vmax.f32 %v274_v35, 0.0  ;;  %v288_v41 = vld [vmem:[%s394_s0 + $0x70] sm:$0xff] }
   0x8   :  { %v49_v30 = vsub.f32 0.0, %v33_v26  ;;  %v48_v31 = vsub.f32 0.0, %v32_v27  ;;  %v51_v36 = vsub.f32 0.0, %v35_v32  ;;  %v39_v44 = vmax.f32 %v283_v40, 0.0 }
   0x9   :  { %v50_v37 = vsub.f32 0.0, %v34_v33  ;;  %v53_v42 = vsub.f32 0.0, %v37_v38  ;;  %v52_v43 = vsub.f32 0.0, %v36_v39  ;;  %v38_v45 = vmax.f32 %v288_v41, 0.0 }
   0xa   :  { %78 = vrot.lane.b32.xlu1 %v43_v12, %s159_s18  ;;  %74 = vrot.lane.b32.xlu0 %v41_v13, %s159_s18  ;;  %v55_v46 = vsub.f32 0.0, %v39_v44 }
   0xb   :  { %v54_v47 = vsub.f32 0.0, %v38_v45 }
   0xe   :  { %82 = vrot.lane.b32.xlu1 %v45_v18, %s159_s18  ;;  %80 = vrot.lane.b32.xlu0 %v44_v19, %s159_s18 }
  0x12   :  { %86 = vrot.lane.b32.xlu1 %v47_v24, %s159_s18  ;;  %84 = vrot.lane.b32.xlu0 %v46_v25, %s159_s18 }
  0x16   :  { %90 = vrot.lane.b32.xlu1 %v49_v30, %s159_s18  ;;  %88 = vrot.lane.b32.xlu0 %v48_v31, %s159_s18 }
  0x1a   :  { %94 = vrot.lane.b32.xlu1 %v51_v36, %s159_s18  ;;  %92 = vrot.lane.b32.xlu0 %v50_v37, %s159_s18 }
  0x1e   :  { %98 = vrot.lane.b32.xlu1 %v53_v42, %s159_s18  ;;  %96 = vrot.lane.b32.xlu0 %v52_v43, %s159_s18 }
  0x22   :  { %102 = vrot.lane.b32.xlu1 %v55_v46, %s159_s18  ;;  %100 = vrot.lane.b32.xlu0 %v54_v47, %s159_s18 }
  0x78   :  { %v77_v48 = vpop.permute.xlu1 %76  ;;  %v73_v49 = vpop.permute.xlu0 %72 }
  0x79   :  { %v123_v50 = vsel %vm120_vm0, %v26_v3, %v77_v48  ;;  %v121_v51 = vsel %vm120_vm0, %v24_v4, %v73_v49 }
  0x7a   :  { %140 = vst.msk [vmem:[%s395_s1 + $0x10] sm:$0xff] %vm137_vm1, %v123_v50  ;;  %138 = vst.msk [vmem:[%s395_s1] sm:$0xff] %vm137_vm1, %v121_v51 }
  0x7c   :  { %v79_v52 = vpop.permute.xlu1 %78  ;;  %v75_v53 = vpop.permute.xlu0 %74 }
  0x7d   :  { %v124_v54 = vsel %vm120_vm0, %v27_v5, %v79_v52  ;;  %v122_v55 = vsel %vm120_vm0, %v25_v7, %v75_v53 }
  0x7e   :  { %141 = vst.msk [vmem:[%s395_s1 + $0x18] sm:$0xff] %vm137_vm1, %v124_v54  ;;  %139 = vst.msk [vmem:[%s395_s1 + $0x8] sm:$0xff] %vm137_vm1, %v122_v55 }
  0x80   :  { %v83_v56 = vpop.permute.xlu1 %82  ;;  %v81_v57 = vpop.permute.xlu0 %80 }
  0x81   :  { %v126_v58 = vsel %vm120_vm0, %v29_v14, %v83_v56  ;;  %v125_v59 = vsel %vm120_vm0, %v28_v15, %v81_v57 }
  0x82   :  { %143 = vst.msk [vmem:[%s395_s1 + $0x28] sm:$0xff] %vm137_vm1, %v126_v58  ;;  %142 = vst.msk [vmem:[%s395_s1 + $0x20] sm:$0xff] %vm137_vm1, %v125_v59 }
  0x84   :  { %v87_v60 = vpop.permute.xlu1 %86  ;;  %v85_v61 = vpop.permute.xlu0 %84 }
  0x85   :  { %v128_v62 = vsel %vm120_vm0, %v31_v20, %v87_v60  ;;  %v127_v63 = vsel %vm120_vm0, %v30_v21, %v85_v61 }
  0x86   :  { %145 = vst.msk [vmem:[%s395_s1 + $0x38] sm:$0xff] %vm137_vm1, %v128_v62  ;;  %144 = vst.msk [vmem:[%s395_s1 + $0x30] sm:$0xff] %vm137_vm1, %v127_v63 }
  0x88   :  { %v91_v0 = vpop.permute.xlu1 %90  ;;  %v89_v1 = vpop.permute.xlu0 %88 }
  0x89   :  { %v130_v2 = vsel %vm120_vm0, %v33_v26, %v91_v0  ;;  %v129_v3 = vsel %vm120_vm0, %v32_v27, %v89_v1 }
  0x8a   :  { %147 = vst.msk [vmem:[%s395_s1 + $0x48] sm:$0xff] %vm137_vm1, %v130_v2  ;;  %146 = vst.msk [vmem:[%s395_s1 + $0x40] sm:$0xff] %vm137_vm1, %v129_v3 }
  0x8c   :  { %v95_v4 = vpop.permute.xlu1 %94  ;;  %v93_v5 = vpop.permute.xlu0 %92 }
  0x8d   :  { %v132_v6 = vsel %vm120_vm0, %v35_v32, %v95_v4  ;;  %v131_v7 = vsel %vm120_vm0, %v34_v33, %v93_v5 }
  0x8e   :  { %149 = vst.msk [vmem:[%s395_s1 + $0x58] sm:$0xff] %vm137_vm1, %v132_v6  ;;  %148 = vst.msk [vmem:[%s395_s1 + $0x50] sm:$0xff] %vm137_vm1, %v131_v7 }
  0x90   :  { %v99_v8 = vpop.permute.xlu1 %98  ;;  %v97_v9 = vpop.permute.xlu0 %96 }
  0x91   :  { %v134_v10 = vsel %vm120_vm0, %v37_v38, %v99_v8  ;;  %v133_v11 = vsel %vm120_vm0, %v36_v39, %v97_v9 }
  0x92   :  { %151 = vst.msk [vmem:[%s395_s1 + $0x68] sm:$0xff] %vm137_vm1, %v134_v10  ;;  %150 = vst.msk [vmem:[%s395_s1 + $0x60] sm:$0xff] %vm137_vm1, %v133_v11 }
  0x94   :  { %v103_v12 = vpop.permute.xlu1 %102  ;;  %v101_v13 = vpop.permute.xlu0 %100 }
  0x95   :  { %v136_v14 = vsel %vm120_vm0, %v39_v44, %v103_v12  ;;  %v135_v15 = vsel %vm120_vm0, %v38_v45, %v101_v13 }
  0x96   :  { %153 = vst.msk [vmem:[%s395_s1 + $0x78] sm:$0xff] %vm137_vm1, %v136_v14  ;;  %152 = vst.msk [vmem:[%s395_s1 + $0x70] sm:$0xff] %vm137_vm1, %v135_v15 }

</bundles_post_ra>
